<compile_context>
chip_gen: v6e
topology: v6e:2x2x1
jax: 0.10.0
libtpu: 0.0.40
codegen_flags: <defaults>
</compile_context>

<pallas_src>
import math

import jax
import jax.numpy as jnp
from jax.experimental import pallas as pl
from jax.experimental.pallas import tpu as pltpu


def _round_up(x, m):
    return ((x + m - 1) // m) * m


def make_positional_encoding(max_len, d_model, dtype=jnp.float32):
    """Same construction as PositionalEncoding.__init__ (sin on even, cos on odd)."""
    position = jnp.arange(max_len, dtype=jnp.float32)[:, None]
    div_term = jnp.exp(
        jnp.arange(0, d_model, 2, dtype=jnp.float32) * (-math.log(10000.0) / d_model)
    )
    pe = jnp.zeros((max_len, d_model), dtype=jnp.float32)
    pe = pe.at[:, 0::2].set(jnp.sin(position * div_term))
    pe = pe.at[:, 1::2].set(jnp.cos(position * div_term))
    return pe.astype(dtype)


def token_and_position_embedding(ids, emb_table, pe_table, mask_zero=False,
                                 token_chunk=512):
    """Forward pass of TokenAndPositionEmbedding.

    ids:       (B, S) int32 token ids
    emb_table: (vocab_size, D) float embedding table (left in HBM, any size)
    pe_table:  (max_len, D) float sinusoidal table (max_len >= S)
    returns (embeddings (B, S, D), mask (B, 1, 1, S) bool or None)
    """
    B, S = ids.shape
    V, D = emb_table.shape
    out_dtype = emb_table.dtype
    itemsize = jnp.dtype(out_dtype).itemsize

    # Token-chunk size TS: one chunk covering the (8-aligned) sequence when it is
    # short, otherwise a 128-aligned chunk so PE/out block shapes stay layout-legal.
    if S <= token_chunk:
        TS = _round_up(S, 8)
    else:
        TS = _round_up(token_chunk, 128)
    S_pad = _round_up(S, TS)
    chunks = S_pad // TS

    ids = ids.astype(jnp.int32)
    ids_pad = ids if S_pad == S else jnp.pad(ids, ((0, 0), (0, S_pad - S)))
    ids_flat = ids_pad.reshape(B * S_pad)          # 1-D int32 -> compact SMEM layout

    max_len = pe_table.shape[0]
    pe_use = pe_table[: min(S_pad, max_len)].astype(out_dtype)
    if pe_use.shape[0] < S_pad:
        pe_use = jnp.pad(pe_use, ((0, S_pad - pe_use.shape[0]), (0, 0)))

    def kernel(ids_smem, emb_hbm, pe_ref, out_ref, gbuf, sem):
        c = pl.program_id(0)        # sequence-chunk index (outer grid axis)
        b = pl.program_id(1)        # batch index (inner grid axis)
        base = b * S_pad + c * TS   # flat offset of this chunk's ids in SMEM

        # Issue one row DMA per token; all TS copies are in flight together so
        # their HBM latencies overlap (DMA-driven gather, table stays in HBM).
        @pl.loop(0, TS)
        def _start(t):
            tok = ids_smem[base + t]
            pltpu.make_async_copy(
                emb_hbm.at[pl.ds(tok, 1)], gbuf.at[pl.ds(t, 1)], sem.at[0]
            ).start()

        # Wait for all row copies (dummy src index — only dst size / sem matter).
        @pl.loop(0, TS)
        def _wait(t):
            pltpu.make_async_copy(
                emb_hbm.at[pl.ds(0, 1)], gbuf.at[pl.ds(t, 1)], sem.at[0]
            ).wait()

        # Gather result + positional encoding -> output tile. Bit-exact rows.
        out_ref[0] = (gbuf[...].astype(jnp.float32)
                      + pe_ref[...].astype(jnp.float32)).astype(out_ref.dtype)

    # VMEM footprint: PE (2x, double-buffered) + out (2x) + gather scratch (1x).
    tile_bytes = TS * D * itemsize
    vmem_need = 5 * tile_bytes + (1 << 20)
    vmem_limit = int(min(max(2 * vmem_need, 32 << 20), 100 << 20))

    grid_spec = pltpu.PrefetchScalarGridSpec(
        num_scalar_prefetch=1,                     # ids_flat -> SMEM
        # chunk axis outer, batch axis inner => PE tile's block index is constant
        # across the inner axis, so each PE chunk is DMA'd once, not B times.
        grid=(chunks, B),
        in_specs=[
            pl.BlockSpec(memory_space=pl.ANY),                       # emb table (HBM)
            pl.BlockSpec((TS, D), lambda c, b, ids_smem: (c, 0)),    # PE chunk
        ],
        out_specs=pl.BlockSpec((1, TS, D), lambda c, b, ids_smem: (b, c, 0)),
        scratch_shapes=[
            pltpu.VMEM((TS, D), out_dtype),        # gathered rows for this chunk
            pltpu.SemaphoreType.DMA((1,)),         # shared completion semaphore
        ],
    )

    out = pl.pallas_call(
        kernel,
        grid_spec=grid_spec,
        out_shape=jax.ShapeDtypeStruct((B, S_pad, D), out_dtype),
        compiler_params=pltpu.CompilerParams(
            # Both axes independent: megacore sharding on v7x; near-no-op on v5e/v6e.
            dimension_semantics=("parallel", "parallel"),
            vmem_limit_bytes=vmem_limit,
        ),
    )(ids_flat, emb_table, pe_use)

    if S_pad != S:
        out = out[:, :S, :]

    mask = None
    if mask_zero:
        # Trivial compare — plain JAX (XLA fuses it); no extra kernel launch.
        mask = (ids != 0)[:, None, None, :]

    return out, mask


if __name__ == "__main__":
    # Small shapes consistent with the module's forward.
    vocab_size = 50
    max_len = 16
    embed_dim = 32
    B, S = 2, 8

    key = jax.random.PRNGKey(0)
    k_ids, k_emb = jax.random.split(key)

    # Deterministic parameter init: nn.Embedding default is N(0, 1).
    emb_table = jax.random.normal(k_emb, (vocab_size, embed_dim), dtype=jnp.float32)
    pe_table = make_positional_encoding(max_len, embed_dim)

    # Token ids; include some zeros so the mask path is exercised.
    ids = jax.random.randint(k_ids, (B, S), 0, vocab_size, dtype=jnp.int32)
    ids = ids.at[0, 0].set(0).at[1, 3].set(0)

    out, mask = token_and_position_embedding(ids, emb_table, pe_table, mask_zero=True)
    out = jax.block_until_ready(out)
    mask = jax.block_until_ready(mask)

    # Pure-JAX reference check.
    ref = jnp.take(emb_table, ids, axis=0) + pe_table[None, :S, :]
    ref_mask = (ids != 0)[:, None, None, :]
    assert out.shape == (B, S, embed_dim) and out.dtype == jnp.float32
    assert mask.shape == (B, 1, 1, S) and mask.dtype == jnp.bool_
    assert jnp.allclose(out, ref, atol=1e-6), float(jnp.max(jnp.abs(out - ref)))
    assert jnp.array_equal(mask, ref_mask)

    print("KERNEL_OK")
</pallas_src>

<mosaic_0001>
module attributes {stable_mosaic.version = 11 : i64} {
  func.func @kernel(%arg0: i32, %arg1: i32, %arg2: memref<16xi32, #tpu.memory_space<smem>>, %arg3: memref<50x32xf32, #tpu.memory_space<any>>, %arg4: memref<8x32xf32, #tpu.memory_space<vmem>>, %arg5: memref<1x8x32xf32, #tpu.memory_space<vmem>>, %arg6: memref<8x32xf32, #tpu.memory_space<vmem>>, %arg7: memref<1x!tpu.dma_semaphore, #tpu.memory_space<semaphore_mem>>) attributes {dimension_semantics = [#tpu.dimension_semantics<parallel>, #tpu.dimension_semantics<parallel>], iteration_bounds = array<i64: 1, 2>, scalar_prefetch = 1 : i64, scratch_operands = 2 : i64, tpu.core_type = #tpu.core_type<tc>, window_params = [{}, {transform_indices = @transform_1, window_bounds = array<i64: 8, 32>}, {transform_indices = @transform_2, window_bounds = array<i64: 1, 8, 32>}]} {
    %c8_i32 = arith.constant 8 : i32
    %0 = arith.muli %arg1, %c8_i32 : i32
    %c8_i32_0 = arith.constant 8 : i32
    %1 = arith.muli %arg0, %c8_i32_0 : i32
    %2 = arith.addi %0, %1 : i32
    %c0_i32 = arith.constant 0 : i32
    %c8_i32_1 = arith.constant 8 : i32
    %3 = arith.addi %c0_i32, %c8_i32_1 : i32
    %c1_i32 = arith.constant 1 : i32
    scf.for %arg8 = %c0_i32 to %3 step %c1_i32  : i32 {
      %c1_i32_13 = arith.constant 1 : i32
      %11 = arith.muli %arg8, %c1_i32_13 : i32
      %c0_i32_14 = arith.constant 0 : i32
      %12 = arith.addi %c0_i32_14, %11 : i32
      %13 = arith.addi %2, %12 : i32
      %14 = arith.index_cast %13 : i32 to index
      %15 = memref.load %arg2[%14] : memref<16xi32, #tpu.memory_space<smem>>
      %c0_i32_15 = arith.constant 0 : i32
      %c0_i32_16 = arith.constant 0 : i32
      %16 = tpu.memref_slice %arg3[%15, %c0_i32_16] : memref<50x32xf32, #tpu.memory_space<any>> -> memref<1x32xf32, #tpu.memory_space<any>>
      %c0_i32_17 = arith.constant 0 : i32
      %17 = tpu.memref_slice %arg6[%12, %c0_i32_17] : memref<8x32xf32, #tpu.memory_space<vmem>> -> memref<1x32xf32, #tpu.memory_space<vmem>>
      %18 = tpu.memref_slice %arg7[%c0_i32_15] : memref<1x!tpu.dma_semaphore, #tpu.memory_space<semaphore_mem>> -> memref<1x!tpu.dma_semaphore, #tpu.memory_space<semaphore_mem>>
      %19 = tpu.memref_squeeze %18 : memref<1x!tpu.dma_semaphore, #tpu.memory_space<semaphore_mem>> -> memref<!tpu.dma_semaphore, #tpu.memory_space<semaphore_mem>>
      tpu.enqueue_dma source(%16 : memref<1x32xf32, #tpu.memory_space<any>>) target(%17 : memref<1x32xf32, #tpu.memory_space<vmem>>) target_semaphore(%19 : memref<!tpu.dma_semaphore, #tpu.memory_space<semaphore_mem>>)
    }
    %c8_i32_2 = arith.constant 8 : i32
    %c0_i32_3 = arith.constant 0 : i32
    %c8_i32_4 = arith.constant 8 : i32
    %4 = arith.addi %c0_i32_3, %c8_i32_4 : i32
    %c1_i32_5 = arith.constant 1 : i32
    scf.for %arg8 = %c0_i32_3 to %4 step %c1_i32_5  : i32 {
      %c1_i32_13 = arith.constant 1 : i32
      %11 = arith.muli %arg8, %c1_i32_13 : i32
      %c0_i32_14 = arith.constant 0 : i32
      %12 = arith.addi %c0_i32_14, %11 : i32
      %c0_i32_15 = arith.constant 0 : i32
      %c0_i32_16 = arith.constant 0 : i32
      %c0_i32_17 = arith.constant 0 : i32
      %13 = tpu.memref_slice %arg3[%c0_i32_16, %c0_i32_17] : memref<50x32xf32, #tpu.memory_space<any>> -> memref<1x32xf32, #tpu.memory_space<any>>
      %c0_i32_18 = arith.constant 0 : i32
      %14 = tpu.memref_slice %arg6[%12, %c0_i32_18] : memref<8x32xf32, #tpu.memory_space<vmem>> -> memref<1x32xf32, #tpu.memory_space<vmem>>
      %15 = tpu.memref_slice %arg7[%c0_i32_15] : memref<1x!tpu.dma_semaphore, #tpu.memory_space<semaphore_mem>> -> memref<1x!tpu.dma_semaphore, #tpu.memory_space<semaphore_mem>>
      %16 = tpu.memref_squeeze %15 : memref<1x!tpu.dma_semaphore, #tpu.memory_space<semaphore_mem>> -> memref<!tpu.dma_semaphore, #tpu.memory_space<semaphore_mem>>
      tpu.wait_dma2 semaphore(%16 : memref<!tpu.dma_semaphore, #tpu.memory_space<semaphore_mem>>) src(%13 : memref<1x32xf32, #tpu.memory_space<any>>) dst(%14 : memref<1x32xf32, #tpu.memory_space<vmem>>)
    }
    %c8_i32_6 = arith.constant 8 : i32
    %c0 = arith.constant 0 : index
    %c0_7 = arith.constant 0 : index
    %5 = vector.load %arg6[%c0, %c0_7] : memref<8x32xf32, #tpu.memory_space<vmem>>, vector<8x32xf32>
    %c0_8 = arith.constant 0 : index
    %c0_9 = arith.constant 0 : index
    %6 = vector.load %arg4[%c0_8, %c0_9] : memref<8x32xf32, #tpu.memory_space<vmem>>, vector<8x32xf32>
    %7 = arith.addf %5, %6 : vector<8x32xf32>
    %c0_10 = arith.constant 0 : index
    %c0_11 = arith.constant 0 : index
    %c0_12 = arith.constant 0 : index
    %8 = vector.load %arg5[%c0_10, %c0_11, %c0_12] : memref<1x8x32xf32, #tpu.memory_space<vmem>>, vector<1x8x32xf32>
    %9 = vector.shape_cast %8 : vector<1x8x32xf32> to vector<8x32xf32>
    %10 = vector.shape_cast %7 : vector<8x32xf32> to vector<1x8x32xf32>
    tpu.vector_store %arg5[%c0_10, %c0_11, %c0_12], %10 {strides = array<i32>} : memref<1x8x32xf32, #tpu.memory_space<vmem>>, vector<1x8x32xf32>,
    return
  }
  func.func @transform_1(%arg0: i32, %arg1: i32, %arg2: memref<16xi32, #tpu.memory_space<smem>>) -> (i32, i32) {
    %c0_i32 = arith.constant 0 : i32
    %c0_i32_0 = arith.constant 0 : i32
    return %arg0, %c0_i32 : i32, i32
  }
  func.func @transform_2(%arg0: i32, %arg1: i32, %arg2: memref<16xi32, #tpu.memory_space<smem>>) -> (i32, i32, i32) {
    %c0_i32 = arith.constant 0 : i32
    %c0_i32_0 = arith.constant 0 : i32
    return %arg1, %arg0, %c0_i32 : i32, i32, i32
  }
}

</mosaic_0001>

<bundles_post_ra>
// kernel: tpu_custom_call.1
= control target key start
LH: loop header
LB: loop body
LE: loop exit
PB: predicated region body
PF: predicated region fallthrough
CT: control target
= control target key end

     0   :  { %s658_s0 = inlined_call_operand.vmem [shape: s32[16], index: 0, kind: input, shape index: {}]   ;;  %s659_s1 = inlined_call_operand.vmem [shape: f32[50,32], index: 1, kind: input, shape index: {}]   ;;  %s660_s2 = inlined_call_operand.vmem [shape: f32[8,32], index: 2, kind: input, shape index: {}]   ;;  %s661_s3 = inlined_call_operand.hbm [shape: f32[2,8,32], index: 3, kind: output, shape index: {}]  }
   0x1   :  { %s8_s14 = sshll.u32 %s658_s0, 4  ;;  %s9_s14 = int_to_ptr.vmem [resolvable:$true] %s8_s14 }
   0x2   :  { %s405_s15 = scalar_lea.vmem %s9_s14, 16  ;;  %p410_p1 = scmp.lt.s32.totalorder %s9_s14, %s9_s14 }
   0x3   :  { %p406_p0 = scmp.ne.s32.totalorder %s9_s14, %s405_s15  ;;  %p411_p2 = scmp.lt.s32.totalorder %s405_s15, %s405_s15 }
   0x5   :  { %p412_p3 = por %p411_p2, %p410_p1 }
   0x7   :  { %p413_p4 = pnand %p412_p3, %p406_p0 }
   0x9   :  { %416 = shalt.err (!%p413_p4)  }
   0xa   :  { %s515_s16 = smov [#allocation5]  }
   0xb   :  { %11 = dma.vmem_to_smem %s9_s14, 16, %s515_s16, [#allocation4] }
   0xc   :  { %475 = dma.done.wait [#allocation4], 16 }
   0xd   :  { %476 = vsyncadd [#allocation4], 4294967280 }
   0xe   :  { %13 = sfence }
   0xf   :  { %14 = vsyncpa [#allocation7], 0 }
  0x10   :  { %16 = vsyncpa [#allocation7 + $0x1], 0  ;;  %s540_s17 = smov 0   ;;  %s542_s18 = smov 0  }
  0x11   :  { %s544_s0 = smov 0   ;;  %s546_s19 = smov 0  }
  0x12   :  { %s548_s20 = smov 0   ;;  %s550_s21 = smov 0  }
  0x13 LB: > { %s321_s22 = sadd.s32 4294967295, %s505_s21   ;;  %s322_s23 = sadd.s32 4294967294, %s505_s21   ;;  %s505_s21 = sphi %s550_s21, %s22_s21   ;;  %s501_s20 = sphi %s548_s20, %s668_s20   ;;  %s497_s19 = sphi %s546_s19, %s667_s19   ;;  %s493_s0 = sphi %s544_s0, %s666_s0   ;;  %s489_s18 = sphi %s542_s18, %s665_s18   ;;  %s485_s17 = sphi %s540_s17, %s664_s17  }
  0x14   : > { %s31_s24 = sadd.s32 1, %s501_s20  ;;  %s69_s25 = sadd.s32 1, %s493_s0 }
  0x15   : > { %p32_p5 = scmp.ge.s32.totalorder %s31_s24, 2  ;;  %p79_p6 = scmp.ne.s32.totalorder %s493_s0, %s489_s18 }
  0x16   : > { %p80_p7 = scmp.eq.s32.totalorder %s321_s22, 1  ;;  %p85_p8 = scmp.ne.s32.totalorder %s489_s18, %s485_s17 }
  0x17   : > { %s670_s24 = smov (%p32_p5, %s31_s24), 0  ;;  %p86_p10 = scmp.eq.s32.totalorder %s322_s23, 1 }
  0x18   : > { %p580_p9 = por %p80_p7, %p79_p6  ;;  %s64_s27 = ssub.s32 %s501_s20, %s670_s24 }
  0x19   : > { %p325_p11 = scmp.ge.s32.totalorder %s505_s21, 1  ;;  %p67_p12 = scmp.eq.s32.totalorder %s64_s27, 0 }
  0x1a   : > { %p587_p13 = por %p86_p10, %p85_p8  ;;  %p111_p0 = scmp.lt.s32.totalorder %s505_s21, 3 }
  0x1b   : > { %s593_s29 = scalar_select %p67_p12, %s493_s0, %s69_s25  }
  0x1c   : > { %p112_p1 = pnand %p325_p11, %p111_p0 }
  0x1d   : > { %s127_s30 = sand.u32 (!%p112_p1), 1, %s489_s18   ;;  %s327_s4 = sshll.u32 (!%p112_p1), %s497_s19, 3 }
  0x1e   : > { %115 = sbr.rel (%p112_p1) target bundleno = 80 (0x50), region = 24  ;;  %s599_s5 = sshll.u32 (!%p112_p1), %s127_s30, 3 }
  0x1f   : > { %s129_s6 = scalar_lea.vmem (!%p112_p1), [#allocation6], %s599_s5  ;;  %s507_s7 = smov (!%p112_p1), 0  }
  0x23 LB: >> { %s143_s8 = sadd.s32 %s509_s7, %s327_s4  ;;  %s146_s13 = scalar_lea.vmem [#allocation2], %s509_s7  ;;  %s509_s7 = sphi %s507_s7, %s142_s7  }
  0x24   : >> { %s144_s9 = sld [smem:[#allocation5 + %s143_s8]] }
  0x2a   : >> { %s145_s12 = scalar_lea.vmem %s659_s1, %s144_s9 }
  0x2b   : >> { %v165_v0 = vld [vmem:[%s145_s12] sm:$0x1] }
  0x2c   : >> { %166 = vst [vmem:[%s146_s13] sm:$0x1] %v165_v0 }
  0x2d   : >> { %192 = vsyncadd [#allocation3], 16  ;;  %s142_s7 = sadd.s32 1, %s509_s7  }
  0x2e   : >> { %p139_p2 = scmp.ge.s32.totalorder %s142_s7, 8  }
  0x2f   : > { %s511_s14 = smov (%p139_p2), 0  }
  0x30   : > { %141 = sbr.rel (!%p139_p2) target bundleno = 35 (0x23), region = 115 }
  0x35 LB: >> { %477 = dma.done.wait [#allocation3], 16  ;;  %s513_s14 = sphi %s511_s14, %s198_s14  }
  0x36   : >> { %478 = vsyncadd [#allocation3], 4294967280  ;;  %s198_s14 = sadd.s32 1, %s513_s14  }
  0x37   : >> { %p195_p3 = scmp.ge.s32.totalorder %s198_s14, 8  }
  0x38   : > { %v202_v1 = vld [vmem:[#allocation2] sm:$0xff] (%p195_p3)  ;;  %vm205_vm0 = vcmask (%p195_p3), 261120   ;;  %s329_s22 = sshll.u32 (%p195_p3), %s497_s19, 7  ;;  %s222_s4 = sshll.u32 (%p195_p3), %s129_s6, 4  ;;  %s223_s4 = int_to_ptr.vmem [resolvable:$true] %s222_s4 }
  0x39   : > { %197 = sbr.rel (!%p195_p3) target bundleno = 53 (0x35), region = 126  ;;  %v203_v2 = vld [vmem:[%s660_s2] sm:$0xff] (%p195_p3)  ;;  %s612_s27 = scalar_lea.hbm (%p195_p3), %s661_s3, %s329_s22 }
  0x3a   : > { %v204_v3 = vadd.f32 (%p195_p3), %v203_v2, %v202_v1  ;;  %s208_s7 = scalar_lea.sflag (%p195_p3), [#allocation7], %s127_s30  ;;  %s417_s8 = scalar_lea.vmem (%p195_p3), %s223_s4, 128 }
  0x3b   : > { %p418_p4 = scmp.ne.s32.totalorder (%p195_p3), %s223_s4, %s417_s8  ;;  %s516_s9 = smov (%p195_p3), [#allocation6]  }
  0x3c   : > { %206 = vst.msk [vmem:[%s129_s6] sm:$0xff] (%p195_p3), %vm205_vm0, %v204_v3  ;;  %s421_s19 = sshll.u32 (%p195_p3), %s516_s9, 4  ;;  %s422_s19 = int_to_ptr.vmem [resolvable:$false] %s421_s19 }
  0x3d   : > { %p419_p5 = pnand (%p195_p3), %p418_p4, %p580_p9  ;;  %s423_s10 = scalar_lea.vmem (%p195_p3), %s422_s19, 256 }
  0x3e   : > { %p424_p7 = scmp.lt.s32.totalorder %s223_s4, %s422_s19  ;;  %p425_p8 = scmp.lt.s32.totalorder %s423_s10, %s417_s8 }
  0x3f   : > { %p420_p6 = pneg %p419_p5 }
  0x40   : > { %p426_p10 = por %p425_p8, %p424_p7 }
  0x42   : > { %p427_p11 = pnand %p426_p10, %p420_p6 }
  0x44   : > { %430 = shalt.err (!%p427_p11)
}
  0x45   : > { %s431_s5 = scalar_lea.hbm %s612_s27, 128  ;;  %s435_s11 = scalar_lea.hbm %s661_s3, 256 }
  0x46   : > { %p432_p12 = scmp.ne.s32.totalorder %s612_s27, %s431_s5  ;;  %p436_p2 = scmp.lt.s32.totalorder %s612_s27, %s661_s3 }
  0x47   : > { %p437_p3 = scmp.lt.s32.totalorder %s435_s11, %s431_s5 }
  0x48   : > { %p433_p0 = pnand %p432_p12, %p580_p9 }
  0x49   : > { %p438_p4 = por %p437_p3, %p436_p2 }
  0x4a   : > { %p434_p1 = pneg %p433_p0 }
  0x4c   : > { %p439_p5 = pnand %p438_p4, %p434_p1 }
  0x4e   : > { %442 = shalt.err (!%p439_p5)
}
  0x4f   : > { %333 = dma.vmem_to_hbm [thread:$0]  (%p580_p9), %s223_s4, 128, %s612_s27, %s208_s7  }
  0x50 PF: > { %p339_p6 = scmp.ge.s32.totalorder %s505_s21, 2  ;;  %s234_s14 = sand.u32 1, %s485_s17  }
  0x51   : > { %s235_s15 = scalar_lea.sflag [#allocation7], %s234_s14 }
  0x52   : > { %p336_p7 = pnand %p339_p6, %p587_p13 }
  0x54   : > { %p337_p8 = pneg %p336_p7 }
  0x56   : > { %480 = dma.done.wait (%p337_p8), %s235_s15, 128  }
  0x57   : > { %482 = vsyncadd (%p337_p8), %s235_s15, 4294967168  ;;  %s22_s21 = sadd.s32 1, %s505_s21   ;;  %s664_s17 = smov %s489_s18 }
  0x58   : > { %p19_p10 = scmp.ge.s32.totalorder %s22_s21, 4   ;;  %s665_s18 = smov %s493_s0 }
  0x59   : > { %s666_s0 = smov %s593_s29  ;;  %s667_s19 = smov %s501_s20 }
  0x5a   : > { %s668_s20 = smov %s670_s24  ;;  %21 = sbr.rel (!%p19_p10) target bundleno = 19 (0x13), region = 137 }
  0x5f   :  { %240 = vsyncpa [#allocation7], 1 }
  0x60   :  { %242 = vsyncpa [#allocation7 + $0x1], 1 }
  0x61   :  { %243 = vsyncmov [#allocation3] }
  0x64   :  { %s244_s26 = vpop.sfrf %243 }
  0x65   :  { %p332_p9 = scmp.ne.s32.totalorder %s244_s26, 0 }
  0x67   :  { %248 = shalt.err (%p332_p9)  }

</bundles_post_ra>
